<compile_context>
chip_gen: v7x
topology: tpu7x:2x2x1
jax: 0.10.0
libtpu: 0.0.40
codegen_flags: <defaults>
</compile_context>

<pallas_src>
import math

import jax
import jax.numpy as jnp
from jax.experimental import pallas as pl
from jax.experimental.pallas import tpu as pltpu


def feed_forward_kernel(x_ref, w1_ref, b1_ref, w2_ref, b2_ref, o_ref):
    # x_ref: (tm, d_model) tile of the flattened input.
    x = x_ref[...]

    # linear_1 on the MXU: bf16 operands, f32 accumulation, f32 bias add.
    h = jnp.dot(x.astype(jnp.bfloat16), w1_ref[...],
                preferred_element_type=jnp.float32) + b1_ref[...]

    # ReLU on the VPU (f32).
    h = jnp.maximum(h, 0.0)

    # Dropout: eval-mode identity (no mask, no scaling).

    # linear_2 on the MXU: bf16 operands, f32 accumulation, f32 bias add.
    y = jnp.dot(h.astype(jnp.bfloat16), w2_ref[...],
                preferred_element_type=jnp.float32) + b2_ref[...]

    o_ref[...] = y.astype(o_ref.dtype)


def _round_up(n, m):
    return ((n + m - 1) // m) * m


def _build_call(rows, d_model, dff, tm, x_dtype, out_dtype, single_buffer_weights):
    # Constant-index (resident) blocks: single-buffer them to halve their VMEM
    # footprint; Pallas double-buffers every input by default.
    resident_kwargs = {}
    if single_buffer_weights:
        resident_kwargs = dict(pipeline_mode=pl.Buffered(1))

    in_specs = [
        pl.BlockSpec((tm, d_model), lambda i: (i, 0)),                      # x tile
        pl.BlockSpec((d_model, dff), lambda i: (0, 0), **resident_kwargs),  # W1
        pl.BlockSpec((1, dff), lambda i: (0, 0), **resident_kwargs),        # b1
        pl.BlockSpec((dff, d_model), lambda i: (0, 0), **resident_kwargs),  # W2
        pl.BlockSpec((1, d_model), lambda i: (0, 0), **resident_kwargs),    # b2
    ]

    # Real VMEM footprint: double-buffered x/out tiles, (single-buffered) bf16
    # weights, f32 biases, plus the f32 (tm, dff) intermediate. Only raise the
    # scoped limit if actually needed, and stay well below v7x's 64 MiB total.
    w_bufs = 1 if single_buffer_weights else 2
    vmem_bytes = (2 * tm * d_model * jnp.dtype(x_dtype).itemsize
                  + 2 * tm * d_model * jnp.dtype(out_dtype).itemsize
                  + w_bufs * (d_model * dff + dff * d_model) * 2
                  + 2 * w_bufs * (dff + d_model) * 4
                  + tm * dff * 4)
    vmem_limit = None
    if vmem_bytes > 32 * 1024 * 1024:
        vmem_limit = min(int(vmem_bytes * 5 // 4), 48 * 1024 * 1024)

    return pl.pallas_call(
        feed_forward_kernel,
        out_shape=jax.ShapeDtypeStruct((rows, d_model), out_dtype),
        grid_spec=pl.GridSpec(
            grid=(pl.cdiv(rows, tm),),
            in_specs=in_specs,
            out_specs=pl.BlockSpec((tm, d_model), lambda i: (i, 0)),
        ),
        compiler_params=pltpu.CompilerParams(
            dimension_semantics=("parallel",),
            vmem_limit_bytes=vmem_limit,
        ),
    )


def feed_forward(x, w1, b1, w2, b2, *, tm=512):
    """x: [..., d_model]. Returns linear_2(relu(linear_1(x))) (dropout in eval mode)."""
    orig_shape = x.shape
    d_model = orig_shape[-1]
    dff = w1.shape[1]
    rows = math.prod(orig_shape[:-1])

    x2d = x.reshape(rows, d_model)

    # Row tile: multiple of 8 sublanes, clamped to the input. Keep >= 2 grid
    # steps whenever rows allow so both v7x TensorCores get a share.
    if rows < 8:
        tm_eff = rows
    else:
        tm_eff = min(tm, _round_up(rows, 8))
        if rows > 8 and pl.cdiv(rows, tm_eff) < 2:
            tm_eff = _round_up((rows + 1) // 2, 8)

    # Weights resident in VMEM in bf16; biases stay f32 and are added post-MXU.
    w1_bf = w1.astype(jnp.bfloat16)
    w2_bf = w2.astype(jnp.bfloat16)
    b1_2d = b1.reshape(1, dff).astype(jnp.float32)
    b2_2d = b2.reshape(1, d_model).astype(jnp.float32)

    args = (x2d, w1_bf, b1_2d, w2_bf, b2_2d)
    try:
        out2d = _build_call(rows, d_model, dff, tm_eff, x.dtype, x.dtype, True)(*args)
    except Exception:
        # Fallback if this JAX build rejects single-buffered (Buffered(1)) specs.
        out2d = _build_call(rows, d_model, dff, tm_eff, x.dtype, x.dtype, False)(*args)

    return out2d.reshape(orig_shape)


def reference(x, w1, b1, w2, b2):
    h = jnp.maximum(jnp.einsum("bsd,df->bsf", x, w1) + b1, 0.0)
    return jnp.einsum("bsf,fd->bsd", h, w2) + b2


if __name__ == "__main__":
    # Small but lane-dense shapes: batch=2, seq=8, d_model=128, dff=256.
    B, S = 2, 8
    D_MODEL, DFF = 128, 256

    key = jax.random.PRNGKey(0)
    kx, kw1, kb1, kw2, kb2 = jax.random.split(key, 5)

    x = jax.random.normal(kx, (B, S, D_MODEL), dtype=jnp.float32)

    # Synthetic Linear parameters, deterministic init.
    w1 = jax.random.normal(kw1, (D_MODEL, DFF), dtype=jnp.float32) / math.sqrt(D_MODEL)
    b1 = jax.random.normal(kb1, (DFF,), dtype=jnp.float32) * 0.01
    w2 = jax.random.normal(kw2, (DFF, D_MODEL), dtype=jnp.float32) / math.sqrt(DFF)
    b2 = jax.random.normal(kb2, (D_MODEL,), dtype=jnp.float32) * 0.01

    out = jax.block_until_ready(feed_forward(x, w1, b1, w2, b2))
    ref = reference(x, w1, b1, w2, b2)

    assert out.shape == (B, S, D_MODEL)
    # bf16 MXU operands => loosened tolerance vs f32 reference.
    assert jnp.allclose(out, ref, atol=5e-2, rtol=5e-2), "mismatch vs reference"

    print("KERNEL_OK")
</pallas_src>

<mosaic_0001>
module attributes {stable_mosaic.version = 11 : i64} {
  func.func @feed_forward_kernel(%arg0: i32, %arg1: memref<8x128xf32, #tpu.memory_space<vmem>>, %arg2: memref<128x256xbf16, #tpu.memory_space<vmem>>, %arg3: memref<1x256xf32, #tpu.memory_space<vmem>>, %arg4: memref<256x128xbf16, #tpu.memory_space<vmem>>, %arg5: memref<1x128xf32, #tpu.memory_space<vmem>>, %arg6: memref<8x128xf32, #tpu.memory_space<vmem>>) attributes {dimension_semantics = [#tpu.dimension_semantics<parallel>], iteration_bounds = array<i64: 2>, scalar_prefetch = 0 : i64, scratch_operands = 0 : i64, tpu.core_type = #tpu.core_type<tc>, window_params = [{transform_indices = @transform_0, window_bounds = array<i64: 8, 128>}, {pipeline_mode = #tpu.pipeline_mode<synchronous>, transform_indices = @transform_1, window_bounds = array<i64: 128, 256>}, {pipeline_mode = #tpu.pipeline_mode<synchronous>, transform_indices = @transform_2, window_bounds = array<i64: 1, 256>}, {pipeline_mode = #tpu.pipeline_mode<synchronous>, transform_indices = @transform_3, window_bounds = array<i64: 256, 128>}, {pipeline_mode = #tpu.pipeline_mode<synchronous>, transform_indices = @transform_4, window_bounds = array<i64: 1, 128>}, {transform_indices = @transform_5, window_bounds = array<i64: 8, 128>}]} {
    %c0 = arith.constant 0 : index
    %c0_0 = arith.constant 0 : index
    %0 = vector.load %arg1[%c0, %c0_0] : memref<8x128xf32, #tpu.memory_space<vmem>>, vector<8x128xf32>
    %1 = arith.truncf %0 : vector<8x128xf32> to vector<8x128xbf16>
    %c0_1 = arith.constant 0 : index
    %c0_2 = arith.constant 0 : index
    %2 = vector.load %arg2[%c0_1, %c0_2] : memref<128x256xbf16, #tpu.memory_space<vmem>>, vector<128x256xbf16>
    %cst = arith.constant dense<0.000000e+00> : vector<8x256xf32>
    %3 = tpu.matmul %1, %2, %cst {dimension_numbers = #tpu.dot_dimension_numbers<[1], [0], [0], [1], [0, 0, 1, 1], [], []>} : vector<8x128xbf16>, vector<128x256xbf16>, vector<8x256xf32> -> vector<8x256xf32>
    %c0_3 = arith.constant 0 : index
    %c0_4 = arith.constant 0 : index
    %4 = vector.load %arg3[%c0_3, %c0_4] : memref<1x256xf32, #tpu.memory_space<vmem>>, vector<1x256xf32>
    %5 = vector.broadcast %4 : vector<1x256xf32> to vector<8x256xf32>
    %6 = arith.addf %3, %5 : vector<8x256xf32>
    %cst_5 = arith.constant 0.000000e+00 : f32
    %7 = vector.broadcast %cst_5 : f32 to vector<8x256xf32>
    %8 = arith.maximumf %6, %7 : vector<8x256xf32>
    %9 = arith.truncf %8 : vector<8x256xf32> to vector<8x256xbf16>
    %c0_6 = arith.constant 0 : index
    %c0_7 = arith.constant 0 : index
    %10 = vector.load %arg4[%c0_6, %c0_7] : memref<256x128xbf16, #tpu.memory_space<vmem>>, vector<256x128xbf16>
    %cst_8 = arith.constant dense<0.000000e+00> : vector<8x128xf32>
    %11 = tpu.matmul %9, %10, %cst_8 {dimension_numbers = #tpu.dot_dimension_numbers<[1], [0], [0], [1], [0, 0, 1, 1], [], []>} : vector<8x256xbf16>, vector<256x128xbf16>, vector<8x128xf32> -> vector<8x128xf32>
    %c0_9 = arith.constant 0 : index
    %c0_10 = arith.constant 0 : index
    %12 = vector.load %arg5[%c0_9, %c0_10] : memref<1x128xf32, #tpu.memory_space<vmem>>, vector<1x128xf32>
    %13 = vector.broadcast %12 : vector<1x128xf32> to vector<8x128xf32>
    %14 = arith.addf %11, %13 : vector<8x128xf32>
    %c0_11 = arith.constant 0 : index
    %c0_12 = arith.constant 0 : index
    %15 = vector.load %arg6[%c0_11, %c0_12] : memref<8x128xf32, #tpu.memory_space<vmem>>, vector<8x128xf32>
    tpu.vector_store %arg6[%c0_11, %c0_12], %14 {strides = array<i32>} : memref<8x128xf32, #tpu.memory_space<vmem>>, vector<8x128xf32>,
    return
  }
  func.func @transform_0(%arg0: i32) -> (i32, i32) {
    %c0_i32 = arith.constant 0 : i32
    %c0_i32_0 = arith.constant 0 : i32
    return %arg0, %c0_i32 : i32, i32
  }
  func.func @transform_1(%arg0: i32) -> (i32, i32) {
    %c0_i32 = arith.constant 0 : i32
    %c0_i32_0 = arith.constant 0 : i32
    %c0_i32_1 = arith.constant 0 : i32
    return %c0_i32, %c0_i32_0 : i32, i32
  }
  func.func @transform_2(%arg0: i32) -> (i32, i32) {
    %c0_i32 = arith.constant 0 : i32
    %c0_i32_0 = arith.constant 0 : i32
    %c0_i32_1 = arith.constant 0 : i32
    return %c0_i32, %c0_i32_0 : i32, i32
  }
  func.func @transform_3(%arg0: i32) -> (i32, i32) {
    %c0_i32 = arith.constant 0 : i32
    %c0_i32_0 = arith.constant 0 : i32
    %c0_i32_1 = arith.constant 0 : i32
    return %c0_i32, %c0_i32_0 : i32, i32
  }
  func.func @transform_4(%arg0: i32) -> (i32, i32) {
    %c0_i32 = arith.constant 0 : i32
    %c0_i32_0 = arith.constant 0 : i32
    %c0_i32_1 = arith.constant 0 : i32
    return %c0_i32, %c0_i32_0 : i32, i32
  }
  func.func @transform_5(%arg0: i32) -> (i32, i32) {
    %c0_i32 = arith.constant 0 : i32
    %c0_i32_0 = arith.constant 0 : i32
    return %arg0, %c0_i32 : i32, i32
  }
}

module attributes {stable_mosaic.version = 11 : i64} {
  func.func @feed_forward_kernel(%arg0: i32, %arg1: memref<8x128xf32, #tpu.memory_space<vmem>>, %arg2: memref<128x256xbf16, #tpu.memory_space<vmem>>, %arg3: memref<1x256xf32, #tpu.memory_space<vmem>>, %arg4: memref<256x128xbf16, #tpu.memory_space<vmem>>, %arg5: memref<1x128xf32, #tpu.memory_space<vmem>>, %arg6: memref<8x128xf32, #tpu.memory_space<vmem>>) attributes {dimension_semantics = [#tpu.dimension_semantics<parallel>], iteration_bounds = array<i64: 2>, scalar_prefetch = 0 : i64, scratch_operands = 0 : i64, tpu.core_type = #tpu.core_type<tc>, window_params = [{transform_indices = @transform_0, window_bounds = array<i64: 8, 128>}, {pipeline_mode = #tpu.pipeline_mode<synchronous>, transform_indices = @transform_1, window_bounds = array<i64: 128, 256>}, {pipeline_mode = #tpu.pipeline_mode<synchronous>, transform_indices = @transform_2, window_bounds = array<i64: 1, 256>}, {pipeline_mode = #tpu.pipeline_mode<synchronous>, transform_indices = @transform_3, window_bounds = array<i64: 256, 128>}, {pipeline_mode = #tpu.pipeline_mode<synchronous>, transform_indices = @transform_4, window_bounds = array<i64: 1, 128>}, {transform_indices = @transform_5, window_bounds = array<i64: 8, 128>}]} {
    %c0 = arith.constant 0 : index
    %c0_0 = arith.constant 0 : index
    %0 = vector.load %arg1[%c0, %c0_0] : memref<8x128xf32, #tpu.memory_space<vmem>>, vector<8x128xf32>
    %1 = arith.truncf %0 : vector<8x128xf32> to vector<8x128xbf16>
    %c0_1 = arith.constant 0 : index
    %c0_2 = arith.constant 0 : index
    %2 = vector.load %arg2[%c0_1, %c0_2] : memref<128x256xbf16, #tpu.memory_space<vmem>>, vector<128x256xbf16>
    %cst = arith.constant dense<0.000000e+00> : vector<8x256xf32>
    %3 = tpu.matmul %1, %2, %cst {dimension_numbers = #tpu.dot_dimension_numbers<[1], [0], [0], [1], [0, 0, 1, 1], [], []>} : vector<8x128xbf16>, vector<128x256xbf16>, vector<8x256xf32> -> vector<8x256xf32>
    %c0_3 = arith.constant 0 : index
    %c0_4 = arith.constant 0 : index
    %4 = vector.load %arg3[%c0_3, %c0_4] : memref<1x256xf32, #tpu.memory_space<vmem>>, vector<1x256xf32>
    %5 = vector.broadcast %4 : vector<1x256xf32> to vector<8x256xf32>
    %6 = arith.addf %3, %5 : vector<8x256xf32>
    %cst_5 = arith.constant 0.000000e+00 : f32
    %7 = vector.broadcast %cst_5 : f32 to vector<8x256xf32>
    %8 = arith.maximumf %6, %7 : vector<8x256xf32>
    %9 = arith.truncf %8 : vector<8x256xf32> to vector<8x256xbf16>
    %c0_6 = arith.constant 0 : index
    %c0_7 = arith.constant 0 : index
    %10 = vector.load %arg4[%c0_6, %c0_7] : memref<256x128xbf16, #tpu.memory_space<vmem>>, vector<256x128xbf16>
    %cst_8 = arith.constant dense<0.000000e+00> : vector<8x128xf32>
    %11 = tpu.matmul %9, %10, %cst_8 {dimension_numbers = #tpu.dot_dimension_numbers<[1], [0], [0], [1], [0, 0, 1, 1], [], []>} : vector<8x256xbf16>, vector<256x128xbf16>, vector<8x128xf32> -> vector<8x128xf32>
    %c0_9 = arith.constant 0 : index
    %c0_10 = arith.constant 0 : index
    %12 = vector.load %arg5[%c0_9, %c0_10] : memref<1x128xf32, #tpu.memory_space<vmem>>, vector<1x128xf32>
    %13 = vector.broadcast %12 : vector<1x128xf32> to vector<8x128xf32>
    %14 = arith.addf %11, %13 : vector<8x128xf32>
    %c0_11 = arith.constant 0 : index
    %c0_12 = arith.constant 0 : index
    %15 = vector.load %arg6[%c0_11, %c0_12] : memref<8x128xf32, #tpu.memory_space<vmem>>, vector<8x128xf32>
    tpu.vector_store %arg6[%c0_11, %c0_12], %14 {strides = array<i32>} : memref<8x128xf32, #tpu.memory_space<vmem>>, vector<8x128xf32>,
    return
  }
  func.func @transform_0(%arg0: i32) -> (i32, i32) {
    %c0_i32 = arith.constant 0 : i32
    %c0_i32_0 = arith.constant 0 : i32
    return %arg0, %c0_i32 : i32, i32
  }
  func.func @transform_1(%arg0: i32) -> (i32, i32) {
    %c0_i32 = arith.constant 0 : i32
    %c0_i32_0 = arith.constant 0 : i32
    %c0_i32_1 = arith.constant 0 : i32
    return %c0_i32, %c0_i32_0 : i32, i32
  }
  func.func @transform_2(%arg0: i32) -> (i32, i32) {
    %c0_i32 = arith.constant 0 : i32
    %c0_i32_0 = arith.constant 0 : i32
    %c0_i32_1 = arith.constant 0 : i32
    return %c0_i32, %c0_i32_0 : i32, i32
  }
  func.func @transform_3(%arg0: i32) -> (i32, i32) {
    %c0_i32 = arith.constant 0 : i32
    %c0_i32_0 = arith.constant 0 : i32
    %c0_i32_1 = arith.constant 0 : i32
    return %c0_i32, %c0_i32_0 : i32, i32
  }
  func.func @transform_4(%arg0: i32) -> (i32, i32) {
    %c0_i32 = arith.constant 0 : i32
    %c0_i32_0 = arith.constant 0 : i32
    %c0_i32_1 = arith.constant 0 : i32
    return %c0_i32, %c0_i32_0 : i32, i32
  }
  func.func @transform_5(%arg0: i32) -> (i32, i32) {
    %c0_i32 = arith.constant 0 : i32
    %c0_i32_0 = arith.constant 0 : i32
    return %arg0, %c0_i32 : i32, i32
  }
}

</mosaic_0001>

<bundles_post_ra>
// kernel: tpu_custom_call.1
= control target key start
LH: loop header
LB: loop body
LE: loop exit
PB: predicated region body
PF: predicated region fallthrough
CT: control target
= control target key end

     0   :  { %10 = vsyncpa [#allocation3], 0  ;;  %s1326_s0 = inlined_call_operand.hbm [shape: f32[16,128], index: 0, kind: input, shape index: {}]   ;;  %s1327_s1 = inlined_call_operand.hbm [shape: bf16[128,256], index: 1, kind: input, shape index: {}]   ;;  %s1328_s2 = inlined_call_operand.vmem [shape: f32[1,256], index: 2, kind: input, shape index: {}]   ;;  %s1329_s3 = inlined_call_operand.hbm [shape: bf16[256,128], index: 3, kind: input, shape index: {}]   ;;  %s1330_s4 = inlined_call_operand.vmem [shape: f32[1,128], index: 4, kind: input, shape index: {}]   ;;  %s1331_s5 = inlined_call_operand.hbm [shape: f32[16,128], index: 5, kind: output, shape index: {}]  }
   0x1   :  { %12 = vsyncpa [#allocation3 + $0x1], 0 }
   0x2   :  { %13 = vsyncpa [#allocation6], 0 }
   0x3   :  { %14 = vsyncpa [#allocation4], 0 }
   0x4   :  { %16 = vsyncpa [#allocation4 + $0x1], 0  ;;  %s1084_s18 = smov 0   ;;  %s1086_s19 = smov 0  }
   0x5   :  { %s1088_s20 = smov 0   ;;  %s1090_s21 = smov 0  }
   0x6 LB: > { %s1105_s22 = sadd.s32 4294967295, %s1043_s21   ;;  %s704_s23 = sadd.s32 4294967294, %s1043_s21   ;;  %s1043_s21 = sphi %s1090_s21, %s1351_s21   ;;  %s1039_s20 = sphi %s1088_s20, %s1350_s20   ;;  %s1035_s19 = sphi %s1086_s19, %s1349_s19   ;;  %s1031_s18 = sphi %s1084_s18, %s1348_s18  }
   0x7   : > { %p42_p0 = scmp.ne.s32.totalorder %s1035_s19, %s1031_s18  ;;  %p1332_p1 = scmp.eq.s32.totalorder %s1105_s22, 0 }
   0x8   : > { %p156_p3 = scmp.eq.s32.totalorder %s704_s23, 1  ;;  %p705_p5 = scmp.ge.s32.totalorder %s1043_s21, 1 }
   0x9   : > { %p1114_p4 = por %p1332_p1, %p42_p0  ;;  %p163_p7 = scmp.lt.s32.totalorder %s1043_s21, 3 }
   0xa   : > { %p1119_p6 = por %p156_p3, %p42_p0  ;;  %s1045_s27 = smov [#allocation5]  }
   0xb   : > { %s1335_s24 = scalar_select %p1114_p4, 1, 0 }
   0xc   : > { %s1336_s25 = scalar_select %p1119_p6, 1, 0 }
   0xd   : > { %p1124_p8 = pnand %p705_p5, %p163_p7  ;;  %s175_s28 = sshll.u32 %s1045_s27, 4  ;;  %s1128_s28 = int_to_ptr.vmem [resolvable:$true] %s175_s28 }
   0xe   : > { %s1046_s30 = smov [#allocation7]   ;;  %s887_s9 = scalar_lea.hbm %s1327_s1, 2048 }
   0xf   : > { %p787_p9 = pneg %p1124_p8  ;;  %s191_s6 = sshll.u32 %s1046_s30, 4  ;;  %s1139_s6 = int_to_ptr.vmem [resolvable:$true] %s191_s6 }
  0x10   : > { %p888_p12 = scmp.ne.s32.totalorder %s1327_s1, %s887_s9  ;;  %p894_p5 = scmp.lt.u32.totalorder %s887_s9, %s1327_s1 }
  0x11   : > { %p1135_p11 = pnand %p787_p9, %p1332_p1 }
  0x13   : > { %p889_p13 = pneg %p1135_p11 }
  0x15   : > { %p890_p0 = pnand %p889_p13, %p888_p12 }
  0x17   : > { %p891_p3 = pneg %p890_p0 }
  0x19   : > { %p896_p7 = pnand %p894_p5, %p891_p3 }
  0x1b   : > { %899 = shalt.err (!%p896_p7)
}
  0x1c   : > { %s900_s14 = scalar_lea.vmem %s1128_s28, 2048  ;;  %p908_p2 = scmp.lt.s32.totalorder %s1128_s28, %s1128_s28 }
  0x1d   : > { %p901_p9 = scmp.ne.s32.totalorder %s1128_s28, %s900_s14  ;;  %p909_p12 = scmp.lt.s32.totalorder %s900_s14, %s900_s14 }
  0x1f   : > { %p903_p10 = pnand %p901_p9, %p889_p13  ;;  %p910_p0 = por %p909_p12, %p908_p2 }
  0x21   : > { %p904_p1 = pneg %p903_p10 }
  0x23   : > { %p911_p6 = pnand %p910_p0, %p904_p1 }
  0x25   : > { %914 = shalt.err (!%p911_p6)
}
  0x26   : > { %s1047_s15 = smov 128   ;;  %s1048_s16 = smov 8  }
  0x27   : > { %790 = dma.hbm_to_vmem [thread:$0]  (!%p1135_p11), %s1327_s1, 2048, %s1128_s28, [#allocation6], %s1047_s15, %s1047_s15, %s1048_s16  }
  0x28   : > { %s915_s7 = scalar_lea.hbm %s1329_s3, 2048 }
  0x29   : > { %p916_p2 = scmp.ne.s32.totalorder %s1329_s3, %s915_s7  ;;  %p922_p10 = scmp.lt.u32.totalorder %s915_s7, %s1329_s3 }
  0x2b   : > { %p918_p1 = pnand %p916_p2, %p889_p13 }
  0x2d   : > { %p919_p6 = pneg %p918_p1 }
  0x2f   : > { %p924_p3 = pnand %p922_p10, %p919_p6 }
  0x31   : > { %927 = shalt.err (!%p924_p3)
}
  0x32   : > { %s928_s28 = scalar_lea.vmem %s1139_s6, 2048  ;;  %p936_p12 = scmp.lt.s32.totalorder %s1139_s6, %s1139_s6 }
  0x33   : > { %p929_p5 = scmp.ne.s32.totalorder %s1139_s6, %s928_s28  ;;  %p937_p0 = scmp.lt.s32.totalorder %s928_s28, %s928_s28 }
  0x35   : > { %p931_p7 = pnand %p929_p5, %p889_p13  ;;  %p938_p2 = por %p937_p0, %p936_p12 }
  0x37   : > { %p932_p9 = pneg %p931_p7 }
  0x39   : > { %p939_p1 = pnand %p938_p2, %p932_p9 }
  0x3b   : > { %942 = shalt.err (!%p939_p1)
}
  0x3c   : > { %s1049_s12 = smov 64   ;;  %s1050_s13 = smov 4  }
  0x3d   : > { %793 = dma.hbm_to_vmem [thread:$0]  (!%p1135_p11), %s1329_s3, 2048, %s1139_s6, [#allocation6], %s1049_s12, %s1049_s12, %s1050_s13  }
  0x3e   : > { %s1194_s16 = sadd.s32 1, %s1043_s21   ;;  %s29_s23 = sadd.s32 1, %s1039_s20 }
  0x3f   : > { %s26_s17 = ssub.s32 %s1043_s21, %s1194_s16  ;;  %p36_p6 = scmp.ne.s32.totalorder %s1039_s20, %s1035_s19 }
  0x40   : > { %p27_p13 = scmp.eq.s32.totalorder %s26_s17, 0  ;;  %p37_p10 = scmp.eq.s32.totalorder %s1043_s21, 0 }
  0x41   : > { %p1339_p5 = scmp.eq.s32.totalorder %s1105_s22, 1  ;;  %p804_p9 = scmp.lt.s32.totalorder %s1043_s21, 2 }
  0x42   : > { %s1203_s27 = scalar_select %p27_p13, %s1039_s20, %s29_s23  }
  0x43   : > { %p38_p3 = por %p37_p10, %p36_p6  ;;  %p1207_p7 = por %p1339_p5, %p36_p6 }
  0x44   : > { %s208_s29 = sand.u32 1, %s1039_s20   ;;  %s710_s6 = sshll.u32 %s1043_s21, 7 }
  0x45   : > { %s1340_s30 = scalar_select %p1207_p7, 1, 0 }
  0x46   : > { %s709_s7 = sshll.u32 %s208_s29, 3  ;;  %s1217_s10 = scalar_lea.hbm %s1326_s0, %s710_s6 }
  0x47   : > { %s212_s11 = scalar_lea.vmem [#allocation2], %s709_s7  ;;  %p1221_p11 = pnand %p804_p9, %p38_p3 }
  0x48   : > { %s219_s28 = sshll.u32 %s212_s11, 4  ;;  %s209_s13 = scalar_lea.sflag [#allocation3], %s208_s29  ;;  %s1219_s28 = int_to_ptr.vmem [resolvable:$true] %s219_s28 }
  0x49   : > { %s943_s14 = scalar_lea.hbm %s1217_s10, 128  ;;  %p945_p0 = pneg %p1221_p11 }
  0x4a   : > { %p944_p12 = scmp.ne.s32.totalorder %s1217_s10, %s943_s14  ;;  %s948_s23 = scalar_lea.hbm %s1326_s0, 256 }
  0x4b   : > { %p949_p13 = scmp.lt.u32.totalorder %s1217_s10, %s1326_s0  ;;  %p950_p6 = scmp.lt.u32.totalorder %s948_s23, %s943_s14 }
  0x4c   : > { %p946_p2 = pnand %p945_p0, %p944_p12  ;;  %p952_p3 = scmp.lt.u32.totalorder %s943_s14, %s1217_s10 }
  0x4d   : > { %p951_p10 = por %p950_p6, %p949_p13 }
  0x4e   : > { %p947_p1 = pneg %p946_p2 }
  0x4f   : > { %p953_p5 = por %p952_p3, %p951_p10 }
  0x51   : > { %p954_p9 = pnand %p953_p5, %p947_p1 }
  0x53   : > { %957 = shalt.err (!%p954_p9)
}
  0x54   : > { %s958_s29 = scalar_lea.vmem %s1219_s28, 128  ;;  %s1051_s8 = smov [#allocation2]  }
  0x55   : > { %p959_p12 = scmp.ne.s32.totalorder %s1219_s28, %s958_s29  ;;  %s963_s9 = sshll.u32 %s1051_s8, 4  ;;  %s964_s9 = int_to_ptr.vmem [resolvable:$false] %s963_s9 }
  0x56   : > { %s965_s11 = scalar_lea.vmem %s964_s9, 256  ;;  %p966_p4 = scmp.lt.s32.totalorder %s1219_s28, %s964_s9 }
  0x57   : > { %p961_p2 = pnand %p959_p12, %p945_p0  ;;  %p967_p13 = scmp.lt.s32.totalorder %s965_s11, %s958_s29 }
  0x59   : > { %p962_p7 = pneg %p961_p2  ;;  %p968_p6 = por %p967_p13, %p966_p4 }
  0x5b   : > { %p969_p10 = pnand %p968_p6, %p962_p7 }
  0x5d   : > { %972 = shalt.err (!%p969_p10)
}
  0x5e   : > { %797 = dma.hbm_to_vmem [thread:$0]  (!%p1221_p11), %s1217_s10, 128, %s1219_s28, %s209_s13  }
  0x5f   : > { %228 = sbr.rel (%p1124_p8) target bundleno = 590 (0x24e), region = 40  ;;  %s1253_s14 = sand.u32 (!%p1124_p8), 1, %s1035_s19  }
  0x60   : > { %s712_s15 = sshll.u32 (!%p1124_p8), %s1253_s14, 3  ;;  %s231_s17 = scalar_lea.sflag (!%p1124_p8), [#allocation3], %s1253_s14 }
  0x61   : > { %s1259_s23 = scalar_lea.vmem (!%p1124_p8), [#allocation2], %s712_s15  ;;  %p1342_p4 = scmp.ne.s32.totalorder (!%p1124_p8), %s1335_s24, 0 }
  0x66   : > { %1018 = dma.done.wait (%p1342_p4), %s231_s17, 128  }
  0x67   : > { %1020 = vsyncadd (%p1342_p4), %s231_s17, 4294967168  ;;  %p1343_p7 = scmp.eq.s32.totalorder %s1105_s22, 0 }
  0x69   : > { %1022 = dma.done.wait (%p1343_p7), [#allocation6], 4096   ;;  %p1344_p8 = pmov %p1343_p7 }
  0x6a   : > { %v1052_v0 = vmov 0   ;;  %v847_v1 = vld [vmem:[#allocation5 + $0x4] ss:$8 sps:$4 sm:$0xff]   ;;  %v849_v2 = vld [vmem:[#allocation5] ss:$8 sps:$4 sm:$0xff]   ;;  %v875_v15 = vld [vmem:[#allocation7 + $0x50] sm:$0xff]   ;;  %v290_v35 = vlaneseq }
  0x6b   : > { %1024 = vsyncadd (%p1344_p8), [#allocation6], 4294963200  ;;  %412 = vmatprep.mubr.bf16.mxu0 %v1052_v0  ;;  %380 = vmatprep.subr.bf16.mxu0 %v847_v1  ;;  %v850_v3 = vld [vmem:[#allocation5 + $0x14] ss:$8 sps:$4 sm:$0xff]   ;;  %v852_v4 = vld [vmem:[#allocation5 + $0x10] ss:$8 sps:$4 sm:$0xff]  }
  0x6c   : > { %381 = vmatpush1.bf16.msra.mxu0 %v849_v2  ;;  %v853_v5 = vld [vmem:[#allocation5 + $0x24] ss:$8 sps:$4 sm:$0xff]   ;;  %v855_v6 = vld [vmem:[#allocation5 + $0x20] ss:$8 sps:$4 sm:$0xff]   ;;  %v856_v7 = vld [vmem:[#allocation5 + $0x34] ss:$8 sps:$4 sm:$0xff]  }
  0x6d   : > { %382 = vmatprep.subr.bf16.mxu0 %v850_v3  ;;  %v858_v8 = vld [vmem:[#allocation5 + $0x30] ss:$8 sps:$4 sm:$0xff]   ;;  %v859_v9 = vld [vmem:[#allocation5 + $0x44] ss:$8 sps:$4 sm:$0xff]   ;;  %v861_v12 = vld [vmem:[#allocation5 + $0x40] ss:$8 sps:$4 sm:$0xff]  }
  0x6e   : > { %v871_v10 = vld [vmem:[#allocation7 + $0x40] sm:$0xff]   ;;  %v873_v13 = vld [vmem:[#allocation7 + $0x48] sm:$0xff]   ;;  %v862_v16 = vld [vmem:[#allocation5 + $0x54] ss:$8 sps:$4 sm:$0xff]   ;;  %v291_v36 = vshrl.u32 %v290_v35, 7  ;;  %s750_s12 = sshll.u32 %s1105_s22, 7 }
  0x6f   : > { %v872_v11 = vld [vmem:[#allocation7] sm:$0xff]   ;;  %753 = vmatprep.subr.bf16.mxu1 %v871_v10  ;;  %v874_v14 = vld [vmem:[#allocation7 + $0x8] sm:$0xff]   ;;  %v864_v17 = vld [vmem:[#allocation5 + $0x50] ss:$8 sps:$4 sm:$0xff]   ;;  %s268_s13 = scalar_lea.vmem [#allocation8], %s712_s15  ;;  %s1282_s8 = scalar_lea.hbm %s1331_s5, %s750_s12 }
  0x70   : > { %383 = vmatpush1.bf16.msra.mxu0 %v852_v4  ;;  %754 = vmatpush3.bf16.msra.mxu1 %v872_v11  ;;  %v876_v18 = vld [vmem:[#allocation7 + $0x10] sm:$0xff]   ;;  %v877_v19 = vld [vmem:[#allocation7 + $0x58] sm:$0xff]   ;;  %v865_v20 = vld [vmem:[#allocation5 + $0x64] ss:$8 sps:$4 sm:$0xff]   ;;  %v292_v37 = vsub.s32 0, %v291_v36  ;;  %v296_v39 = vsub.s32 1, %v291_v36 }
  0x71   : > { %384 = vmatprep.subr.bf16.mxu0 %v853_v5  ;;  %755 = vmatprep.subr.bf16.mxu1 %v873_v13  ;;  %v867_v21 = vld [vmem:[#allocation5 + $0x60] ss:$8 sps:$4 sm:$0xff]   ;;  %v868_v22 = vld [vmem:[#allocation5 + $0x74] ss:$8 sps:$4 sm:$0xff]   ;;  %v870_v26 = vld [vmem:[#allocation5 + $0x70] ss:$8 sps:$4 sm:$0xff]  }
  0x72   : > { %v878_v23 = vld [vmem:[#allocation7 + $0x18] sm:$0xff]   ;;  %v879_v24 = vld [vmem:[#allocation7 + $0x60] sm:$0xff]   ;;  %v881_v28 = vld [vmem:[#allocation7 + $0x68] sm:$0xff]   ;;  %s615_s7 = sshll.u32 %s268_s13, 4  ;;  %s602_s9 = scalar_lea.sflag [#allocation4], %s1253_s14  ;;  %s1284_s7 = int_to_ptr.vmem [resolvable:$true] %s615_s7 }
  0x73   : > { %v880_v25 = vld [vmem:[#allocation7 + $0x20] sm:$0xff]   ;;  %v270_v27 = vld [vmem:[%s1259_s23] sm:$0xff]  ;;  %v882_v30 = vld [vmem:[#allocation7 + $0x28] sm:$0xff]   ;;  %s973_s22 = scalar_lea.vmem %s1284_s7, 128  ;;  %p1345_p0 = scmp.ne.s32.totalorder %s1340_s30, 0 }
  0x74   : > { %385 = vmatpush1.bf16.msra.mxu0 %v855_v6  ;;  %756 = vmatpush3.bf16.msra.mxu1 %v874_v14  ;;  %v271_v29 = vpack.c.bf16 %v270_v27, %v270_v27  ;;  %v883_v31 = vld [vmem:[#allocation7 + $0x70] sm:$0xff]   ;;  %v885_v33 = vld [vmem:[#allocation7 + $0x78] sm:$0xff]   ;;  %p974_p11 = scmp.ne.s32.totalorder %s1284_s7, %s973_s22  ;;  %s1053_s11 = smov [#allocation8]  }
  0x75   : > { %386 = vmatprep.subr.bf16.mxu0 %v856_v7  ;;  %757 = vmatprep.subr.bf16.mxu1 %v875_v15  ;;  %v884_v32 = vld [vmem:[#allocation7 + $0x30] sm:$0xff]   ;;  %v886_v34 = vld [vmem:[#allocation7 + $0x38] sm:$0xff]   ;;  %s977_s15 = sshll.u32 %s1053_s11, 4  ;;  %s978_s15 = int_to_ptr.vmem [resolvable:$false] %s977_s15 }
  0x76   : > { %v288_v38 = vld [vmem:[%s1328_s2] sm:$0x3]  ;;  %p975_p1 = pnand %p974_p11, %p1345_p0  ;;  %s979_s17 = scalar_lea.vmem %s978_s15, 256 }
  0x77   : > { %v293_v40 = vrot.slane %v288_v38, %v292_v37  ;;  %v297_v41 = vrot.slane %v288_v38, %v296_v39  ;;  %v732_v53 = vld [vmem:[%s1330_s4] ss:$0 sm:$0xff]  ;;  %p980_p5 = scmp.lt.s32.totalorder %s1284_s7, %s978_s15  ;;  %p981_p9 = scmp.lt.s32.totalorder %s979_s17, %s973_s22 }
  0x78   : > { %387 = vmatpush1.bf16.msra.mxu0 %v858_v8  ;;  %758 = vmatpush3.bf16.msra.mxu1 %v876_v18  ;;  %p976_p3 = pneg %p975_p1 }
  0x79   : > { %388 = vmatprep.subr.bf16.mxu0 %v859_v9  ;;  %759 = vmatprep.subr.bf16.mxu1 %v877_v19  ;;  %p982_p12 = por %p981_p9, %p980_p5 }
  0x7b   : > { %p983_p2 = pnand %p982_p12, %p976_p3 }
  0x7c   : > { %389 = vmatpush1.bf16.msra.mxu0 %v861_v12  ;;  %760 = vmatpush3.bf16.msra.mxu1 %v878_v23 }
  0x7d   : > { %390 = vmatprep.subr.bf16.mxu0 %v862_v16  ;;  %761 = vmatprep.subr.bf16.mxu1 %v879_v24 }
  0x80   : > { %391 = vmatpush1.bf16.msra.mxu0 %v864_v17  ;;  %762 = vmatpush3.bf16.msra.mxu1 %v880_v25 }
  0x81   : > { %392 = vmatprep.subr.bf16.mxu0 %v865_v20  ;;  %763 = vmatprep.subr.bf16.mxu1 %v881_v28 }
  0x84   : > { %393 = vmatpush1.bf16.msra.mxu0 %v867_v21  ;;  %764 = vmatpush3.bf16.msra.mxu1 %v882_v30 }
  0x85   : > { %394 = vmatprep.subr.bf16.mxu0 %v868_v22  ;;  %765 = vmatprep.subr.bf16.mxu1 %v883_v31 }
  0x88   : > { %395 = vmatpush1.bf16.msra.mxu0 %v870_v26  ;;  %766 = vmatpush3.bf16.msra.mxu1 %v884_v32 }
  0x89   : > { %767 = vmatprep.subr.bf16.mxu1 %v885_v33 }
  0x8b   : > { %413 = vmatmul.mubr.bf16.vlgmr.msra.gmra.mrb[0].mxu0 %v271_v29 }
  0x8c   : > { %768 = vmatpush3.bf16.msra.mxu1 %v886_v34 }
 0x15e   : > { %v414_v42 = vpop.f32.mrb[0].mxu0 }
 0x15f   : > { %v415_v43 = vadd.f32 %v414_v42, %v293_v40  ;;  %v416_v44 = vpop.f32.mrb[1].mxu0 }
 0x160   : > { %v417_v45 = vadd.f32 %v416_v44, %v297_v41  ;;  %v418_v46 = vpop.f32.mrb[2].mxu0 }
 0x161   : > { %v421_v47 = vmax.f32 %v415_v43, 0.0  ;;  %v419_v48 = vpop.f32.mrb[3].mxu0 }
 0x162   : > { %v422_v49 = vmax.f32 %v417_v45, 0.0 }
 0x163   : > { %v423_v51 = vpack.c.bf16 %v421_v47, %v421_v47 }
 0x164   : > { %v424_v50 = vpack.c.bf16 %v422_v49, %v422_v49 }
 0x166   : > { %592 = vmatprep.mubr.bf16.mxu1 %v424_v50 }
 0x167   : > { %593 = vmatmul.mubr.bf16.vlgmr.msra.gmra.mrb[0].mxu1 %v423_v51 }
 0x23a   : > { %v769_v52 = vpop.f32.mrb[0].mxu1 }
 0x23b   : > { %v770_v54 = vpop.f32.mrb[1].mxu1 }
 0x23c   : > { %v771_v55 = vadd.f32 %v770_v54, %v769_v52  ;;  %v772_v56 = vpop.f32.mrb[2].mxu1 }
 0x23d   : > { %v773_v57 = vpop.f32.mrb[3].mxu1 }
 0x23e   : > { %v595_v58 = vadd.f32 %v771_v55, %v732_v53 }
 0x240   : > { %600 = vst [vmem:[%s268_s13] sm:$0xff] %v595_v58 }
 0x241   : > { %986 = shalt.err (!%p983_p2)
}
 0x242   : > { %s987_s14 = scalar_lea.hbm %s1282_s8, 128  ;;  %s991_s26 = scalar_lea.hbm %s1331_s5, 256 }
 0x243   : > { %p988_p13 = scmp.ne.s32.totalorder %s1282_s8, %s987_s14  ;;  %p992_p4 = scmp.lt.u32.totalorder %s1282_s8, %s1331_s5 }
 0x244   : > { %p993_p7 = scmp.lt.u32.totalorder %s991_s26, %s987_s14  ;;  %p995_p11 = scmp.lt.u32.totalorder %s987_s14, %s1282_s8 }
 0x245   : > { %p989_p6 = pnand %p988_p13, %p1345_p0 }
 0x246   : > { %p994_p8 = por %p993_p7, %p992_p4 }
 0x247   : > { %p990_p10 = pneg %p989_p6 }
 0x248   : > { %p996_p1 = por %p995_p11, %p994_p8 }
 0x24a   : > { %p997_p3 = pnand %p996_p1, %p990_p10 }
 0x24c   : > { %1000 = shalt.err (!%p997_p3)
}
 0x24d   : > { %785 = dma.vmem_to_hbm [thread:$0]  (%p1345_p0), %s1284_s7, 128, %s1282_s8, %s602_s9  }
 0x24e PF: > { %s627_s12 = sand.u32 1, %s1031_s18   ;;  %p1346_p5 = scmp.ne.s32.totalorder %s1336_s25, 0 }
 0x24f   : > { %p1347_p9 = scmp.ge.s32.totalorder %s1043_s21, 2  ;;  %s628_s13 = scalar_lea.sflag [#allocation4], %s627_s12 }
 0x251   : > { %p799_p12 = pnand %p1347_p9, %p1346_p5 }
 0x253   : > { %1026 = dma.done.wait (!%p799_p12), %s628_s13, 128  }
 0x254   : > { %1028 = vsyncadd (!%p799_p12), %s628_s13, 4294967168  ;;  %p19_p2 = scmp.ge.s32.totalorder %s1194_s16, 4   ;;  %s1348_s18 = smov %s1035_s19 }
 0x255   : > { %s1349_s19 = smov %s1039_s20  ;;  %s1350_s20 = smov %s1203_s27 }
 0x256   : > { %s1351_s21 = smov %s1194_s16  ;;  %21 = sbr.rel (!%p19_p2) target bundleno = 6 (0x6), region = 93 }
 0x25d   :  { %633 = vsyncpa [#allocation3], 1 }
 0x25e   :  { %635 = vsyncpa [#allocation3 + $0x1], 1 }
 0x25f   :  { %636 = vsyncpa [#allocation6], 1 }
 0x260   :  { %637 = vsyncpa [#allocation4], 1 }
 0x261   :  { %639 = vsyncpa [#allocation4 + $0x1], 1 }

// kernel: tpu_custom_call.1
= control target key start
LH: loop header
LB: loop body
LE: loop exit
PB: predicated region body
PF: predicated region fallthrough
CT: control target
= control target key end

     0   :  { %10 = vsyncpa [#allocation3], 0  ;;  %s1326_s0 = inlined_call_operand.hbm [shape: f32[16,128], index: 0, kind: input, shape index: {}]   ;;  %s1327_s1 = inlined_call_operand.hbm [shape: bf16[128,256], index: 1, kind: input, shape index: {}]   ;;  %s1328_s2 = inlined_call_operand.vmem [shape: f32[1,256], index: 2, kind: input, shape index: {}]   ;;  %s1329_s3 = inlined_call_operand.hbm [shape: bf16[256,128], index: 3, kind: input, shape index: {}]   ;;  %s1330_s4 = inlined_call_operand.vmem [shape: f32[1,128], index: 4, kind: input, shape index: {}]   ;;  %s1331_s5 = inlined_call_operand.hbm [shape: f32[16,128], index: 5, kind: output, shape index: {}]  }
   0x1   :  { %12 = vsyncpa [#allocation3 + $0x1], 0 }
   0x2   :  { %13 = vsyncpa [#allocation6], 0 }
   0x3   :  { %14 = vsyncpa [#allocation4], 0 }
   0x4   :  { %16 = vsyncpa [#allocation4 + $0x1], 0  ;;  %s1084_s18 = smov 0   ;;  %s1086_s19 = smov 0  }
   0x5   :  { %s1088_s20 = smov 0   ;;  %s1090_s21 = smov 0  }
   0x6 LB: > { %s1105_s22 = sadd.s32 4294967295, %s1043_s21   ;;  %s704_s23 = sadd.s32 4294967294, %s1043_s21   ;;  %s1043_s21 = sphi %s1090_s21, %s1351_s21   ;;  %s1039_s20 = sphi %s1088_s20, %s1350_s20   ;;  %s1035_s19 = sphi %s1086_s19, %s1349_s19   ;;  %s1031_s18 = sphi %s1084_s18, %s1348_s18  }
   0x7   : > { %p42_p0 = scmp.ne.s32.totalorder %s1035_s19, %s1031_s18  ;;  %p1332_p1 = scmp.eq.s32.totalorder %s1105_s22, 0 }
   0x8   : > { %p156_p3 = scmp.eq.s32.totalorder %s704_s23, 1  ;;  %p705_p5 = scmp.ge.s32.totalorder %s1043_s21, 1 }
   0x9   : > { %p1114_p4 = por %p1332_p1, %p42_p0  ;;  %p163_p7 = scmp.lt.s32.totalorder %s1043_s21, 3 }
   0xa   : > { %p1119_p6 = por %p156_p3, %p42_p0  ;;  %s1045_s27 = smov [#allocation5]  }
   0xb   : > { %s1335_s24 = scalar_select %p1114_p4, 1, 0 }
   0xc   : > { %s1336_s25 = scalar_select %p1119_p6, 1, 0 }
   0xd   : > { %p1124_p8 = pnand %p705_p5, %p163_p7  ;;  %s175_s28 = sshll.u32 %s1045_s27, 4  ;;  %s1128_s28 = int_to_ptr.vmem [resolvable:$true] %s175_s28 }
   0xe   : > { %s1046_s30 = smov [#allocation7]   ;;  %s887_s9 = scalar_lea.hbm %s1327_s1, 2048 }
   0xf   : > { %p787_p9 = pneg %p1124_p8  ;;  %s191_s6 = sshll.u32 %s1046_s30, 4  ;;  %s1139_s6 = int_to_ptr.vmem [resolvable:$true] %s191_s6 }
  0x10   : > { %p888_p12 = scmp.ne.s32.totalorder %s1327_s1, %s887_s9  ;;  %p894_p5 = scmp.lt.u32.totalorder %s887_s9, %s1327_s1 }
  0x11   : > { %p1135_p11 = pnand %p787_p9, %p1332_p1 }
  0x13   : > { %p889_p13 = pneg %p1135_p11 }
  0x15   : > { %p890_p0 = pnand %p889_p13, %p888_p12 }
  0x17   : > { %p891_p3 = pneg %p890_p0 }
  0x19   : > { %p896_p7 = pnand %p894_p5, %p891_p3 }
  0x1b   : > { %899 = shalt.err (!%p896_p7)
}
  0x1c   : > { %s900_s14 = scalar_lea.vmem %s1128_s28, 2048  ;;  %p908_p2 = scmp.lt.s32.totalorder %s1128_s28, %s1128_s28 }
  0x1d   : > { %p901_p9 = scmp.ne.s32.totalorder %s1128_s28, %s900_s14  ;;  %p909_p12 = scmp.lt.s32.totalorder %s900_s14, %s900_s14 }
  0x1f   : > { %p903_p10 = pnand %p901_p9, %p889_p13  ;;  %p910_p0 = por %p909_p12, %p908_p2 }
  0x21   : > { %p904_p1 = pneg %p903_p10 }
  0x23   : > { %p911_p6 = pnand %p910_p0, %p904_p1 }
  0x25   : > { %914 = shalt.err (!%p911_p6)
}
  0x26   : > { %s1047_s15 = smov 128   ;;  %s1048_s16 = smov 8  }
  0x27   : > { %790 = dma.hbm_to_vmem [thread:$0]  (!%p1135_p11), %s1327_s1, 2048, %s1128_s28, [#allocation6], %s1047_s15, %s1047_s15, %s1048_s16  }
  0x28   : > { %s915_s7 = scalar_lea.hbm %s1329_s3, 2048 }
  0x29   : > { %p916_p2 = scmp.ne.s32.totalorder %s1329_s3, %s915_s7  ;;  %p922_p10 = scmp.lt.u32.totalorder %s915_s7, %s1329_s3 }
  0x2b   : > { %p918_p1 = pnand %p916_p2, %p889_p13 }
  0x2d   : > { %p919_p6 = pneg %p918_p1 }
  0x2f   : > { %p924_p3 = pnand %p922_p10, %p919_p6 }
  0x31   : > { %927 = shalt.err (!%p924_p3)
}
  0x32   : > { %s928_s28 = scalar_lea.vmem %s1139_s6, 2048  ;;  %p936_p12 = scmp.lt.s32.totalorder %s1139_s6, %s1139_s6 }
  0x33   : > { %p929_p5 = scmp.ne.s32.totalorder %s1139_s6, %s928_s28  ;;  %p937_p0 = scmp.lt.s32.totalorder %s928_s28, %s928_s28 }
  0x35   : > { %p931_p7 = pnand %p929_p5, %p889_p13  ;;  %p938_p2 = por %p937_p0, %p936_p12 }
  0x37   : > { %p932_p9 = pneg %p931_p7 }
  0x39   : > { %p939_p1 = pnand %p938_p2, %p932_p9 }
  0x3b   : > { %942 = shalt.err (!%p939_p1)
}
  0x3c   : > { %s1049_s12 = smov 64   ;;  %s1050_s13 = smov 4  }
  0x3d   : > { %793 = dma.hbm_to_vmem [thread:$0]  (!%p1135_p11), %s1329_s3, 2048, %s1139_s6, [#allocation6], %s1049_s12, %s1049_s12, %s1050_s13  }
  0x3e   : > { %s1194_s16 = sadd.s32 1, %s1043_s21   ;;  %s29_s23 = sadd.s32 1, %s1039_s20 }
  0x3f   : > { %s26_s17 = ssub.s32 %s1043_s21, %s1194_s16  ;;  %p36_p6 = scmp.ne.s32.totalorder %s1039_s20, %s1035_s19 }
  0x40   : > { %p27_p13 = scmp.eq.s32.totalorder %s26_s17, 0  ;;  %p37_p10 = scmp.eq.s32.totalorder %s1043_s21, 0 }
  0x41   : > { %p1339_p5 = scmp.eq.s32.totalorder %s1105_s22, 1  ;;  %p804_p9 = scmp.lt.s32.totalorder %s1043_s21, 2 }
  0x42   : > { %s1203_s27 = scalar_select %p27_p13, %s1039_s20, %s29_s23  }
  0x43   : > { %p38_p3 = por %p37_p10, %p36_p6  ;;  %p1207_p7 = por %p1339_p5, %p36_p6 }
  0x44   : > { %s208_s29 = sand.u32 1, %s1039_s20   ;;  %s710_s6 = sshll.u32 %s1043_s21, 7 }
  0x45   : > { %s1340_s30 = scalar_select %p1207_p7, 1, 0 }
  0x46   : > { %s709_s7 = sshll.u32 %s208_s29, 3  ;;  %s1217_s10 = scalar_lea.hbm %s1326_s0, %s710_s6 }
  0x47   : > { %s212_s11 = scalar_lea.vmem [#allocation2], %s709_s7  ;;  %p1221_p11 = pnand %p804_p9, %p38_p3 }
  0x48   : > { %s219_s28 = sshll.u32 %s212_s11, 4  ;;  %s209_s13 = scalar_lea.sflag [#allocation3], %s208_s29  ;;  %s1219_s28 = int_to_ptr.vmem [resolvable:$true] %s219_s28 }
  0x49   : > { %s943_s14 = scalar_lea.hbm %s1217_s10, 128  ;;  %p945_p0 = pneg %p1221_p11 }
  0x4a   : > { %p944_p12 = scmp.ne.s32.totalorder %s1217_s10, %s943_s14  ;;  %s948_s23 = scalar_lea.hbm %s1326_s0, 256 }
  0x4b   : > { %p949_p13 = scmp.lt.u32.totalorder %s1217_s10, %s1326_s0  ;;  %p950_p6 = scmp.lt.u32.totalorder %s948_s23, %s943_s14 }
  0x4c   : > { %p946_p2 = pnand %p945_p0, %p944_p12  ;;  %p952_p3 = scmp.lt.u32.totalorder %s943_s14, %s1217_s10 }
  0x4d   : > { %p951_p10 = por %p950_p6, %p949_p13 }
  0x4e   : > { %p947_p1 = pneg %p946_p2 }
  0x4f   : > { %p953_p5 = por %p952_p3, %p951_p10 }
  0x51   : > { %p954_p9 = pnand %p953_p5, %p947_p1 }
  0x53   : > { %957 = shalt.err (!%p954_p9)
}
  0x54   : > { %s958_s29 = scalar_lea.vmem %s1219_s28, 128  ;;  %s1051_s8 = smov [#allocation2]  }
  0x55   : > { %p959_p12 = scmp.ne.s32.totalorder %s1219_s28, %s958_s29  ;;  %s963_s9 = sshll.u32 %s1051_s8, 4  ;;  %s964_s9 = int_to_ptr.vmem [resolvable:$false] %s963_s9 }
  0x56   : > { %s965_s11 = scalar_lea.vmem %s964_s9, 256  ;;  %p966_p4 = scmp.lt.s32.totalorder %s1219_s28, %s964_s9 }
  0x57   : > { %p961_p2 = pnand %p959_p12, %p945_p0  ;;  %p967_p13 = scmp.lt.s32.totalorder %s965_s11, %s958_s29 }
  0x59   : > { %p962_p7 = pneg %p961_p2  ;;  %p968_p6 = por %p967_p13, %p966_p4 }
  0x5b   : > { %p969_p10 = pnand %p968_p6, %p962_p7 }
  0x5d   : > { %972 = shalt.err (!%p969_p10)
}
  0x5e   : > { %797 = dma.hbm_to_vmem [thread:$0]  (!%p1221_p11), %s1217_s10, 128, %s1219_s28, %s209_s13  }
  0x5f   : > { %228 = sbr.rel (%p1124_p8) target bundleno = 590 (0x24e), region = 40  ;;  %s1253_s14 = sand.u32 (!%p1124_p8), 1, %s1035_s19  }
  0x60   : > { %s712_s15 = sshll.u32 (!%p1124_p8), %s1253_s14, 3  ;;  %s231_s17 = scalar_lea.sflag (!%p1124_p8), [#allocation3], %s1253_s14 }
  0x61   : > { %s1259_s23 = scalar_lea.vmem (!%p1124_p8), [#allocation2], %s712_s15  ;;  %p1342_p4 = scmp.ne.s32.totalorder (!%p1124_p8), %s1335_s24, 0 }
  0x66   : > { %1018 = dma.done.wait (%p1342_p4), %s231_s17, 128  }
  0x67   : > { %1020 = vsyncadd (%p1342_p4), %s231_s17, 4294967168  ;;  %p1343_p7 = scmp.eq.s32.totalorder %s1105_s22, 0 }
  0x69   : > { %1022 = dma.done.wait (%p1343_p7), [#allocation6], 4096   ;;  %p1344_p8 = pmov %p1343_p7 }
  0x6a   : > { %v1052_v0 = vmov 0   ;;  %v847_v1 = vld [vmem:[#allocation5 + $0x4] ss:$8 sps:$4 sm:$0xff]   ;;  %v849_v2 = vld [vmem:[#allocation5] ss:$8 sps:$4 sm:$0xff]   ;;  %v875_v15 = vld [vmem:[#allocation7 + $0x50] sm:$0xff]   ;;  %v290_v35 = vlaneseq }
  0x6b   : > { %1024 = vsyncadd (%p1344_p8), [#allocation6], 4294963200  ;;  %412 = vmatprep.mubr.bf16.mxu0 %v1052_v0  ;;  %380 = vmatprep.subr.bf16.mxu0 %v847_v1  ;;  %v850_v3 = vld [vmem:[#allocation5 + $0x14] ss:$8 sps:$4 sm:$0xff]   ;;  %v852_v4 = vld [vmem:[#allocation5 + $0x10] ss:$8 sps:$4 sm:$0xff]  }
  0x6c   : > { %381 = vmatpush1.bf16.msra.mxu0 %v849_v2  ;;  %v853_v5 = vld [vmem:[#allocation5 + $0x24] ss:$8 sps:$4 sm:$0xff]   ;;  %v855_v6 = vld [vmem:[#allocation5 + $0x20] ss:$8 sps:$4 sm:$0xff]   ;;  %v856_v7 = vld [vmem:[#allocation5 + $0x34] ss:$8 sps:$4 sm:$0xff]  }
  0x6d   : > { %382 = vmatprep.subr.bf16.mxu0 %v850_v3  ;;  %v858_v8 = vld [vmem:[#allocation5 + $0x30] ss:$8 sps:$4 sm:$0xff]   ;;  %v859_v9 = vld [vmem:[#allocation5 + $0x44] ss:$8 sps:$4 sm:$0xff]   ;;  %v861_v12 = vld [vmem:[#allocation5 + $0x40] ss:$8 sps:$4 sm:$0xff]  }
  0x6e   : > { %v871_v10 = vld [vmem:[#allocation7 + $0x40] sm:$0xff]   ;;  %v873_v13 = vld [vmem:[#allocation7 + $0x48] sm:$0xff]   ;;  %v862_v16 = vld [vmem:[#allocation5 + $0x54] ss:$8 sps:$4 sm:$0xff]   ;;  %v291_v36 = vshrl.u32 %v290_v35, 7  ;;  %s750_s12 = sshll.u32 %s1105_s22, 7 }
  0x6f   : > { %v872_v11 = vld [vmem:[#allocation7] sm:$0xff]   ;;  %753 = vmatprep.subr.bf16.mxu1 %v871_v10  ;;  %v874_v14 = vld [vmem:[#allocation7 + $0x8] sm:$0xff]   ;;  %v864_v17 = vld [vmem:[#allocation5 + $0x50] ss:$8 sps:$4 sm:$0xff]   ;;  %s268_s13 = scalar_lea.vmem [#allocation8], %s712_s15  ;;  %s1282_s8 = scalar_lea.hbm %s1331_s5, %s750_s12 }
  0x70   : > { %383 = vmatpush1.bf16.msra.mxu0 %v852_v4  ;;  %754 = vmatpush3.bf16.msra.mxu1 %v872_v11  ;;  %v876_v18 = vld [vmem:[#allocation7 + $0x10] sm:$0xff]   ;;  %v877_v19 = vld [vmem:[#allocation7 + $0x58] sm:$0xff]   ;;  %v865_v20 = vld [vmem:[#allocation5 + $0x64] ss:$8 sps:$4 sm:$0xff]   ;;  %v292_v37 = vsub.s32 0, %v291_v36  ;;  %v296_v39 = vsub.s32 1, %v291_v36 }
  0x71   : > { %384 = vmatprep.subr.bf16.mxu0 %v853_v5  ;;  %755 = vmatprep.subr.bf16.mxu1 %v873_v13  ;;  %v867_v21 = vld [vmem:[#allocation5 + $0x60] ss:$8 sps:$4 sm:$0xff]   ;;  %v868_v22 = vld [vmem:[#allocation5 + $0x74] ss:$8 sps:$4 sm:$0xff]   ;;  %v870_v26 = vld [vmem:[#allocation5 + $0x70] ss:$8 sps:$4 sm:$0xff]  }
  0x72   : > { %v878_v23 = vld [vmem:[#allocation7 + $0x18] sm:$0xff]   ;;  %v879_v24 = vld [vmem:[#allocation7 + $0x60] sm:$0xff]   ;;  %v881_v28 = vld [vmem:[#allocation7 + $0x68] sm:$0xff]   ;;  %s615_s7 = sshll.u32 %s268_s13, 4  ;;  %s602_s9 = scalar_lea.sflag [#allocation4], %s1253_s14  ;;  %s1284_s7 = int_to_ptr.vmem [resolvable:$true] %s615_s7 }
  0x73   : > { %v880_v25 = vld [vmem:[#allocation7 + $0x20] sm:$0xff]   ;;  %v270_v27 = vld [vmem:[%s1259_s23] sm:$0xff]  ;;  %v882_v30 = vld [vmem:[#allocation7 + $0x28] sm:$0xff]   ;;  %s973_s22 = scalar_lea.vmem %s1284_s7, 128  ;;  %p1345_p0 = scmp.ne.s32.totalorder %s1340_s30, 0 }
  0x74   : > { %385 = vmatpush1.bf16.msra.mxu0 %v855_v6  ;;  %756 = vmatpush3.bf16.msra.mxu1 %v874_v14  ;;  %v271_v29 = vpack.c.bf16 %v270_v27, %v270_v27  ;;  %v883_v31 = vld [vmem:[#allocation7 + $0x70] sm:$0xff]   ;;  %v885_v33 = vld [vmem:[#allocation7 + $0x78] sm:$0xff]   ;;  %p974_p11 = scmp.ne.s32.totalorder %s1284_s7, %s973_s22  ;;  %s1053_s11 = smov [#allocation8]  }
  0x75   : > { %386 = vmatprep.subr.bf16.mxu0 %v856_v7  ;;  %757 = vmatprep.subr.bf16.mxu1 %v875_v15  ;;  %v884_v32 = vld [vmem:[#allocation7 + $0x30] sm:$0xff]   ;;  %v886_v34 = vld [vmem:[#allocation7 + $0x38] sm:$0xff]   ;;  %s977_s15 = sshll.u32 %s1053_s11, 4  ;;  %s978_s15 = int_to_ptr.vmem [resolvable:$false] %s977_s15 }
  0x76   : > { %v288_v38 = vld [vmem:[%s1328_s2] sm:$0x3]  ;;  %p975_p1 = pnand %p974_p11, %p1345_p0  ;;  %s979_s17 = scalar_lea.vmem %s978_s15, 256 }
  0x77   : > { %v293_v40 = vrot.slane %v288_v38, %v292_v37  ;;  %v297_v41 = vrot.slane %v288_v38, %v296_v39  ;;  %v732_v53 = vld [vmem:[%s1330_s4] ss:$0 sm:$0xff]  ;;  %p980_p5 = scmp.lt.s32.totalorder %s1284_s7, %s978_s15  ;;  %p981_p9 = scmp.lt.s32.totalorder %s979_s17, %s973_s22 }
  0x78   : > { %387 = vmatpush1.bf16.msra.mxu0 %v858_v8  ;;  %758 = vmatpush3.bf16.msra.mxu1 %v876_v18  ;;  %p976_p3 = pneg %p975_p1 }
  0x79   : > { %388 = vmatprep.subr.bf16.mxu0 %v859_v9  ;;  %759 = vmatprep.subr.bf16.mxu1 %v877_v19  ;;  %p982_p12 = por %p981_p9, %p980_p5 }
  0x7b   : > { %p983_p2 = pnand %p982_p12, %p976_p3 }
  0x7c   : > { %389 = vmatpush1.bf16.msra.mxu0 %v861_v12  ;;  %760 = vmatpush3.bf16.msra.mxu1 %v878_v23 }
  0x7d   : > { %390 = vmatprep.subr.bf16.mxu0 %v862_v16  ;;  %761 = vmatprep.subr.bf16.mxu1 %v879_v24 }
  0x80   : > { %391 = vmatpush1.bf16.msra.mxu0 %v864_v17  ;;  %762 = vmatpush3.bf16.msra.mxu1 %v880_v25 }
  0x81   : > { %392 = vmatprep.subr.bf16.mxu0 %v865_v20  ;;  %763 = vmatprep.subr.bf16.mxu1 %v881_v28 }
  0x84   : > { %393 = vmatpush1.bf16.msra.mxu0 %v867_v21  ;;  %764 = vmatpush3.bf16.msra.mxu1 %v882_v30 }
  0x85   : > { %394 = vmatprep.subr.bf16.mxu0 %v868_v22  ;;  %765 = vmatprep.subr.bf16.mxu1 %v883_v31 }
  0x88   : > { %395 = vmatpush1.bf16.msra.mxu0 %v870_v26  ;;  %766 = vmatpush3.bf16.msra.mxu1 %v884_v32 }
  0x89   : > { %767 = vmatprep.subr.bf16.mxu1 %v885_v33 }
  0x8b   : > { %413 = vmatmul.mubr.bf16.vlgmr.msra.gmra.mrb[0].mxu0 %v271_v29 }
  0x8c   : > { %768 = vmatpush3.bf16.msra.mxu1 %v886_v34 }
 0x15e   : > { %v414_v42 = vpop.f32.mrb[0].mxu0 }
 0x15f   : > { %v415_v43 = vadd.f32 %v414_v42, %v293_v40  ;;  %v416_v44 = vpop.f32.mrb[1].mxu0 }
 0x160   : > { %v417_v45 = vadd.f32 %v416_v44, %v297_v41  ;;  %v418_v46 = vpop.f32.mrb[2].mxu0 }
 0x161   : > { %v421_v47 = vmax.f32 %v415_v43, 0.0  ;;  %v419_v48 = vpop.f32.mrb[3].mxu0 }
 0x162   : > { %v422_v49 = vmax.f32 %v417_v45, 0.0 }
 0x163   : > { %v423_v51 = vpack.c.bf16 %v421_v47, %v421_v47 }
 0x164   : > { %v424_v50 = vpack.c.bf16 %v422_v49, %v422_v49 }
 0x166   : > { %592 = vmatprep.mubr.bf16.mxu1 %v424_v50 }
 0x167   : > { %593 = vmatmul.mubr.bf16.vlgmr.msra.gmra.mrb[0].mxu1 %v423_v51 }
 0x23a   : > { %v769_v52 = vpop.f32.mrb[0].mxu1 }
 0x23b   : > { %v770_v54 = vpop.f32.mrb[1].mxu1 }
 0x23c   : > { %v771_v55 = vadd.f32 %v770_v54, %v769_v52  ;;  %v772_v56 = vpop.f32.mrb[2].mxu1 }
 0x23d   : > { %v773_v57 = vpop.f32.mrb[3].mxu1 }
 0x23e   : > { %v595_v58 = vadd.f32 %v771_v55, %v732_v53 }
 0x240   : > { %600 = vst [vmem:[%s268_s13] sm:$0xff] %v595_v58 }
 0x241   : > { %986 = shalt.err (!%p983_p2)
}
 0x242   : > { %s987_s14 = scalar_lea.hbm %s1282_s8, 128  ;;  %s991_s26 = scalar_lea.hbm %s1331_s5, 256 }
 0x243   : > { %p988_p13 = scmp.ne.s32.totalorder %s1282_s8, %s987_s14  ;;  %p992_p4 = scmp.lt.u32.totalorder %s1282_s8, %s1331_s5 }
 0x244   : > { %p993_p7 = scmp.lt.u32.totalorder %s991_s26, %s987_s14  ;;  %p995_p11 = scmp.lt.u32.totalorder %s987_s14, %s1282_s8 }
 0x245   : > { %p989_p6 = pnand %p988_p13, %p1345_p0 }
 0x246   : > { %p994_p8 = por %p993_p7, %p992_p4 }
 0x247   : > { %p990_p10 = pneg %p989_p6 }
 0x248   : > { %p996_p1 = por %p995_p11, %p994_p8 }
 0x24a   : > { %p997_p3 = pnand %p996_p1, %p990_p10 }
 0x24c   : > { %1000 = shalt.err (!%p997_p3)
}
 0x24d   : > { %785 = dma.vmem_to_hbm [thread:$0]  (%p1345_p0), %s1284_s7, 128, %s1282_s8, %s602_s9  }
 0x24e PF: > { %s627_s12 = sand.u32 1, %s1031_s18   ;;  %p1346_p5 = scmp.ne.s32.totalorder %s1336_s25, 0 }
 0x24f   : > { %p1347_p9 = scmp.ge.s32.totalorder %s1043_s21, 2  ;;  %s628_s13 = scalar_lea.sflag [#allocation4], %s627_s12 }
 0x251   : > { %p799_p12 = pnand %p1347_p9, %p1346_p5 }
 0x253   : > { %1026 = dma.done.wait (!%p799_p12), %s628_s13, 128  }
 0x254   : > { %1028 = vsyncadd (!%p799_p12), %s628_s13, 4294967168  ;;  %p19_p2 = scmp.ge.s32.totalorder %s1194_s16, 4   ;;  %s1348_s18 = smov %s1035_s19 }
 0x255   : > { %s1349_s19 = smov %s1039_s20  ;;  %s1350_s20 = smov %s1203_s27 }
 0x256   : > { %s1351_s21 = smov %s1194_s16  ;;  %21 = sbr.rel (!%p19_p2) target bundleno = 6 (0x6), region = 93 }
 0x25d   :  { %633 = vsyncpa [#allocation3], 1 }
 0x25e   :  { %635 = vsyncpa [#allocation3 + $0x1], 1 }
 0x25f   :  { %636 = vsyncpa [#allocation6], 1 }
 0x260   :  { %637 = vsyncpa [#allocation4], 1 }
 0x261   :  { %639 = vsyncpa [#allocation4 + $0x1], 1 }

</bundles_post_ra>
